<compile_context>
chip_gen: v7x
topology: tpu7x:2x2x1
jax: 0.10.0
libtpu: 0.0.40
codegen_flags: <defaults>
</compile_context>

<pallas_src>
import functools

import jax
import jax.numpy as jnp
from jax.experimental import pallas as pl
from jax.experimental.pallas import tpu as pltpu

IN_FEATS = 128
HIDDEN = 50
NUM_DOMAINS = 5          # len(config.source_domains)
HIDDEN_PAD = 128         # lane-dense hidden dim (zero-padded 50 -> 128)
OUT_PAD = 128            # lane-dense compute width for layer 2 (store only 5)

_SUB = 8                 # sublane granularity for the batch tile
_TB_CAP = 4096           # max rows/tile; fits default scoped VMEM everywhere


def _round_up(n, m):
    return ((n + m - 1) // m) * m


def _cdiv(a, b):
    return (a + b - 1) // b


def domain_classifier_kernel(x_ref, w1_ref, b1_ref, w2_ref, b2_ref, o_ref,
                             *, compute_dtype):
    # Lane-dense compute: both matmuls run with 128 lanes on the MXU; only the
    # final store is narrow (NUM_DOMAINS lanes).
    x = x_ref[...]                                              # (tb, 128)
    if x.dtype != compute_dtype:
        x = x.astype(compute_dtype)                             # in-kernel cast
    h = jnp.dot(x, w1_ref[...], preferred_element_type=jnp.float32)
    h = jnp.maximum(h + b1_ref[...], 0.0)                       # (tb, 128) f32
    out = jnp.dot(h.astype(w2_ref.dtype), w2_ref[...],
                  preferred_element_type=jnp.float32)           # (tb, 128) f32
    out = out + b2_ref[...]
    # Store only the valid NUM_DOMAINS lanes -> 16-25x fewer output HBM bytes.
    o_ref[...] = out[:, :NUM_DOMAINS].astype(o_ref.dtype)


def prepare_params(w1, b1, w2, b2, compute_dtype=jnp.float32):
    """Pad/cast parameters to the lane-dense kernel layout.  Call ONCE at init.

    w1: (128, 50); b1: (50,); w2: (50, 5); b2: (5,)   (stored as (in, out),
    i.e. transposed vs. torch nn.Linear's (out, in)).
    Zero padding is numerically inert.
    """
    w1_p = jnp.zeros((IN_FEATS, HIDDEN_PAD), compute_dtype)
    w1_p = w1_p.at[:, :HIDDEN].set(w1.astype(compute_dtype))
    w2_p = jnp.zeros((HIDDEN_PAD, OUT_PAD), compute_dtype)
    w2_p = w2_p.at[:HIDDEN, :NUM_DOMAINS].set(w2.astype(compute_dtype))
    # Biases stay f32 so bias-add / ReLU run on the f32 VPU path (v5e has no
    # bf16 VPU); the matmul accumulator is f32 anyway.
    b1_p = jnp.zeros((1, HIDDEN_PAD), jnp.float32)
    b1_p = b1_p.at[:, :HIDDEN].set(b1.astype(jnp.float32)[None, :])
    b2_p = jnp.zeros((1, OUT_PAD), jnp.float32)
    b2_p = b2_p.at[:, :NUM_DOMAINS].set(b2.astype(jnp.float32)[None, :])
    return (w1_p, b1_p, w2_p, b2_p)


def _pick_tile(B, tb):
    tb_cap = min(_round_up(tb, _SUB), _TB_CAP)
    if B >= 1024:
        # >= 2 grid steps so v7x's two TensorCores both get work; each step
        # still moves >= ~0.25 MiB of x.
        tb_eff = min(tb_cap, _round_up(_cdiv(B, 2), _SUB))
    else:
        tb_eff = min(tb_cap, _round_up(B, _SUB))
    return max(_SUB, tb_eff)


def domain_classifier(x, params, alpha=1.0, *, tb=_TB_CAP):
    """Forward pass of DomainClassifier.

    x: (B, 128); params: output of prepare_params().
    GradientReversal is the identity in the forward pass (alpha only scales
    the backward gradient).
    Note: for very small B this op is launch-overhead bound on every TPU
    generation; prefer fusing it into the surrounding model in that regime.
    """
    # TODO(synk): gradient-reversal backward (-alpha * grad) belongs in a
    # custom_vjp wrapper around this forward kernel, not in the kernel itself.
    del alpha
    w1_p, b1_p, w2_p, b2_p = params
    B, F = x.shape
    assert F == IN_FEATS
    compute_dtype = w1_p.dtype
    out_dtype = x.dtype

    tb_eff = _pick_tile(B, tb)
    grid = (_cdiv(B, tb_eff),)          # non-divisible grid: last block masked

    x_itemsz = jnp.dtype(x.dtype).itemsize
    w_itemsz = jnp.dtype(compute_dtype).itemsize
    out_itemsz = jnp.dtype(out_dtype).itemsize
    cost = pl.CostEstimate(
        flops=2 * B * (IN_FEATS * HIDDEN_PAD + HIDDEN_PAD * OUT_PAD),
        transcendentals=0,
        bytes_accessed=(B * IN_FEATS * x_itemsz
                        + B * NUM_DOMAINS * out_itemsz
                        + (w1_p.size + w2_p.size) * w_itemsz
                        + (b1_p.size + b2_p.size) * 4),
    )

    kernel = functools.partial(domain_classifier_kernel,
                               compute_dtype=compute_dtype)

    return pl.pallas_call(
        kernel,
        out_shape=jax.ShapeDtypeStruct((B, NUM_DOMAINS), out_dtype),
        grid_spec=pltpu.PrefetchScalarGridSpec(
            num_scalar_prefetch=0,
            grid=grid,
            in_specs=[
                pl.BlockSpec((tb_eff, IN_FEATS), lambda i: (i, 0)),      # x
                pl.BlockSpec((IN_FEATS, HIDDEN_PAD), lambda i: (0, 0)),  # W1
                pl.BlockSpec((1, HIDDEN_PAD), lambda i: (0, 0)),         # b1
                pl.BlockSpec((HIDDEN_PAD, OUT_PAD), lambda i: (0, 0)),   # W2
                pl.BlockSpec((1, OUT_PAD), lambda i: (0, 0)),            # b2
            ],
            # Narrow output block: last dim equals the full array dim (legal).
            out_specs=pl.BlockSpec((tb_eff, NUM_DOMAINS), lambda i: (i, 0)),
        ),
        compiler_params=pltpu.CompilerParams(
            dimension_semantics=("parallel",),
        ),
        cost_estimate=cost,
    )(x, w1_p, b1_p, w2_p, b2_p)


def init_params(key):
    """Deterministic parameter init matching the nn.Linear shapes."""
    k1, k2, k3, k4 = jax.random.split(key, 4)
    lim1 = 1.0 / jnp.sqrt(IN_FEATS)
    w1 = jax.random.uniform(k1, (IN_FEATS, HIDDEN), jnp.float32, -lim1, lim1)
    b1 = jax.random.uniform(k2, (HIDDEN,), jnp.float32, -lim1, lim1)
    lim2 = 1.0 / jnp.sqrt(HIDDEN)
    w2 = jax.random.uniform(k3, (HIDDEN, NUM_DOMAINS), jnp.float32, -lim2, lim2)
    b2 = jax.random.uniform(k4, (NUM_DOMAINS,), jnp.float32, -lim2, lim2)
    return w1, b1, w2, b2


def reference(x, w1, b1, w2, b2):
    h = jnp.maximum(x @ w1 + b1, 0.0)
    return h @ w2 + b2


if __name__ == "__main__":
    key = jax.random.PRNGKey(0)
    kx, kx2, kx3, kp = jax.random.split(key, 4)

    w1, b1, w2, b2 = init_params(kp)
    params = prepare_params(w1, b1, w2, b2)          # pad/cast ONCE at init

    # 1) config.batch_size-sized batch, single tile.
    B = 128
    x = jax.random.normal(kx, (B, IN_FEATS), jnp.float32)
    out = jax.block_until_ready(domain_classifier(x, params, alpha=1.0))
    ref = reference(x, w1, b1, w2, b2)
    assert out.shape == (B, NUM_DOMAINS)
    assert jnp.allclose(out, ref, atol=1e-4, rtol=1e-4)

    # 2) Ragged small batch: exercises the masked partial last block.
    B2 = 13
    x2 = jax.random.normal(kx2, (B2, IN_FEATS), jnp.float32)
    out2 = jax.block_until_ready(domain_classifier(x2, params))
    ref2 = reference(x2, w1, b1, w2, b2)
    assert out2.shape == (B2, NUM_DOMAINS)
    assert jnp.allclose(out2, ref2, atol=1e-4, rtol=1e-4)

    # 3) Larger ragged batch: >=2 grid steps (megacore) + masked last block.
    B3 = 2061
    x3 = jax.random.normal(kx3, (B3, IN_FEATS), jnp.float32)
    out3 = jax.block_until_ready(domain_classifier(x3, params))
    ref3 = reference(x3, w1, b1, w2, b2)
    assert out3.shape == (B3, NUM_DOMAINS)
    assert jnp.allclose(out3, ref3, atol=1e-4, rtol=1e-4)

    print("KERNEL_OK")
</pallas_src>

<mosaic_0001>
module attributes {stable_mosaic.version = 11 : i64} {
  func.func @domain_classifier_kernel(%arg0: i32, %arg1: memref<128x128xf32, #tpu.memory_space<vmem>>, %arg2: memref<128x128xf32, #tpu.memory_space<vmem>>, %arg3: memref<1x128xf32, #tpu.memory_space<vmem>>, %arg4: memref<128x128xf32, #tpu.memory_space<vmem>>, %arg5: memref<1x128xf32, #tpu.memory_space<vmem>>, %arg6: memref<128x5xf32, #tpu.memory_space<vmem>>) attributes {dimension_semantics = [#tpu.dimension_semantics<parallel>], iteration_bounds = array<i64: 1>, scalar_prefetch = 0 : i64, scratch_operands = 0 : i64, tpu.core_type = #tpu.core_type<tc>, window_params = [{transform_indices = @transform_0, window_bounds = array<i64: 128, 128>}, {pipeline_mode = #tpu.pipeline_mode<synchronous>, transform_indices = @transform_1, window_bounds = array<i64: 128, 128>}, {pipeline_mode = #tpu.pipeline_mode<synchronous>, transform_indices = @transform_2, window_bounds = array<i64: 1, 128>}, {pipeline_mode = #tpu.pipeline_mode<synchronous>, transform_indices = @transform_3, window_bounds = array<i64: 128, 128>}, {pipeline_mode = #tpu.pipeline_mode<synchronous>, transform_indices = @transform_4, window_bounds = array<i64: 1, 128>}, {transform_indices = @transform_5, window_bounds = array<i64: 128, 5>}]} {
    %c0 = arith.constant 0 : index
    %c0_0 = arith.constant 0 : index
    %0 = vector.load %arg1[%c0, %c0_0] : memref<128x128xf32, #tpu.memory_space<vmem>>, vector<128x128xf32>
    %c0_1 = arith.constant 0 : index
    %c0_2 = arith.constant 0 : index
    %1 = vector.load %arg2[%c0_1, %c0_2] : memref<128x128xf32, #tpu.memory_space<vmem>>, vector<128x128xf32>
    %cst = arith.constant dense<0.000000e+00> : vector<128x128xf32>
    %2 = tpu.matmul %0, %1, %cst {dimension_numbers = #tpu.dot_dimension_numbers<[1], [0], [0], [1], [0, 0, 1, 1], [], []>} : vector<128x128xf32>, vector<128x128xf32>, vector<128x128xf32> -> vector<128x128xf32>
    %c0_3 = arith.constant 0 : index
    %c0_4 = arith.constant 0 : index
    %3 = vector.load %arg3[%c0_3, %c0_4] : memref<1x128xf32, #tpu.memory_space<vmem>>, vector<1x128xf32>
    %4 = vector.broadcast %3 : vector<1x128xf32> to vector<128x128xf32>
    %5 = arith.addf %2, %4 : vector<128x128xf32>
    %cst_5 = arith.constant 0.000000e+00 : f32
    %6 = vector.broadcast %cst_5 : f32 to vector<128x128xf32>
    %7 = arith.maximumf %5, %6 : vector<128x128xf32>
    %c0_6 = arith.constant 0 : index
    %c0_7 = arith.constant 0 : index
    %8 = vector.load %arg4[%c0_6, %c0_7] : memref<128x128xf32, #tpu.memory_space<vmem>>, vector<128x128xf32>
    %cst_8 = arith.constant dense<0.000000e+00> : vector<128x128xf32>
    %9 = tpu.matmul %7, %8, %cst_8 {dimension_numbers = #tpu.dot_dimension_numbers<[1], [0], [0], [1], [0, 0, 1, 1], [], []>} : vector<128x128xf32>, vector<128x128xf32>, vector<128x128xf32> -> vector<128x128xf32>
    %c0_9 = arith.constant 0 : index
    %c0_10 = arith.constant 0 : index
    %10 = vector.load %arg5[%c0_9, %c0_10] : memref<1x128xf32, #tpu.memory_space<vmem>>, vector<1x128xf32>
    %11 = vector.broadcast %10 : vector<1x128xf32> to vector<128x128xf32>
    %12 = arith.addf %9, %11 : vector<128x128xf32>
    %13 = vector.extract_strided_slice %12 {offsets = [0, 0], sizes = [128, 5], strides = [1, 1]} : vector<128x128xf32> to vector<128x5xf32>
    %c0_11 = arith.constant 0 : index
    %c0_12 = arith.constant 0 : index
    %14 = vector.load %arg6[%c0_11, %c0_12] : memref<128x5xf32, #tpu.memory_space<vmem>>, vector<128x5xf32>
    tpu.vector_store %arg6[%c0_11, %c0_12], %13 {strides = array<i32>} : memref<128x5xf32, #tpu.memory_space<vmem>>, vector<128x5xf32>,
    return
  }
  func.func @transform_0(%arg0: i32) -> (i32, i32) {
    %c0_i32 = arith.constant 0 : i32
    %c0_i32_0 = arith.constant 0 : i32
    return %arg0, %c0_i32 : i32, i32
  }
  func.func @transform_1(%arg0: i32) -> (i32, i32) {
    %c0_i32 = arith.constant 0 : i32
    %c0_i32_0 = arith.constant 0 : i32
    %c0_i32_1 = arith.constant 0 : i32
    return %c0_i32, %c0_i32_0 : i32, i32
  }
  func.func @transform_2(%arg0: i32) -> (i32, i32) {
    %c0_i32 = arith.constant 0 : i32
    %c0_i32_0 = arith.constant 0 : i32
    %c0_i32_1 = arith.constant 0 : i32
    return %c0_i32, %c0_i32_0 : i32, i32
  }
  func.func @transform_3(%arg0: i32) -> (i32, i32) {
    %c0_i32 = arith.constant 0 : i32
    %c0_i32_0 = arith.constant 0 : i32
    %c0_i32_1 = arith.constant 0 : i32
    return %c0_i32, %c0_i32_0 : i32, i32
  }
  func.func @transform_4(%arg0: i32) -> (i32, i32) {
    %c0_i32 = arith.constant 0 : i32
    %c0_i32_0 = arith.constant 0 : i32
    %c0_i32_1 = arith.constant 0 : i32
    return %c0_i32, %c0_i32_0 : i32, i32
  }
  func.func @transform_5(%arg0: i32) -> (i32, i32) {
    %c0_i32 = arith.constant 0 : i32
    %c0_i32_0 = arith.constant 0 : i32
    return %arg0, %c0_i32 : i32, i32
  }
}

</mosaic_0001>

<bundles_post_ra>
// kernel: tpu_custom_call.1
= control target key start
LH: loop header
LB: loop body
LE: loop exit
PB: predicated region body
PF: predicated region fallthrough
CT: control target
= control target key end

     0   :  { %10 = vsyncpa [#allocation3], 0  ;;  %s926_s0 = inlined_call_operand.hbm [shape: f32[128,128], index: 0, kind: input, shape index: {}]   ;;  %s927_s1 = inlined_call_operand.hbm [shape: f32[128,128], index: 1, kind: input, shape index: {}]   ;;  %s928_s2 = inlined_call_operand.vmem [shape: f32[1,128], index: 2, kind: input, shape index: {}]   ;;  %s929_s3 = inlined_call_operand.hbm [shape: f32[128,128], index: 3, kind: input, shape index: {}]   ;;  %s930_s4 = inlined_call_operand.vmem [shape: f32[1,128], index: 4, kind: input, shape index: {}]   ;;  %s931_s5 = inlined_call_operand.vmem [shape: f32[128,5], index: 5, kind: output, shape index: {}]  }
   0x1   :  { %11 = vsyncpa [#allocation5], 0  ;;  %s769_s18 = smov [#allocation4]   ;;  %s770_s20 = smov [#allocation2]  }
   0x2   :  { %s29_s19 = sshll.u32 %s769_s18, 4  ;;  %s17_s21 = sshll.u32 %s770_s20, 4  ;;  %s30_s19 = int_to_ptr.vmem [resolvable:$true] %s29_s19  ;;  %s804_s21 = int_to_ptr.vmem [resolvable:$true] %s17_s21 }
   0x3   :  { %s699_s24 = scalar_lea.hbm %s927_s1, 2048 }
   0x4   :  { %p700_p0 = scmp.ne.s32.totalorder %s927_s1, %s699_s24  ;;  %p703_p1 = scmp.lt.u32.totalorder %s699_s24, %s927_s1 }
   0x6   :  { %p705_p2 = pnand %p703_p1, %p700_p0 }
   0x8   :  { %708 = shalt.err (!%p705_p2)
}
   0x9   :  { %s709_s29 = scalar_lea.vmem %s30_s19, 2048  ;;  %p714_p4 = scmp.lt.s32.totalorder %s30_s19, %s30_s19 }
   0xa   :  { %p710_p3 = scmp.ne.s32.totalorder %s30_s19, %s709_s29  ;;  %p715_p5 = scmp.lt.s32.totalorder %s709_s29, %s709_s29 }
   0xc   :  { %p716_p6 = por %p715_p5, %p714_p4 }
   0xe   :  { %p717_p7 = pnand %p716_p6, %p710_p3 }
  0x10   :  { %720 = shalt.err (!%p717_p7)
}
  0x11   :  { %s771_s30 = smov 128   ;;  %s772_s6 = smov 8  }
  0x12   :  { %35 = dma.hbm_to_vmem [thread:$0]  %s927_s1, 2048, %s30_s19, [#allocation5], %s771_s30, %s771_s30, %s772_s6  }
  0x13   :  { %s721_s11 = scalar_lea.hbm %s926_s0, 2048 }
  0x14   :  { %p722_p8 = scmp.ne.s32.totalorder %s926_s0, %s721_s11  ;;  %p725_p9 = scmp.lt.u32.totalorder %s721_s11, %s926_s0 }
  0x16   :  { %p727_p10 = pnand %p725_p9, %p722_p8 }
  0x18   :  { %730 = shalt.err (!%p727_p10)
}
  0x19   :  { %s731_s16 = scalar_lea.vmem %s804_s21, 2048  ;;  %p736_p12 = scmp.lt.s32.totalorder %s804_s21, %s804_s21 }
  0x1a   :  { %p732_p11 = scmp.ne.s32.totalorder %s804_s21, %s731_s16  ;;  %p737_p13 = scmp.lt.s32.totalorder %s731_s16, %s731_s16 }
  0x1c   :  { %p738_p0 = por %p737_p13, %p736_p12 }
  0x1e   :  { %p739_p1 = pnand %p738_p0, %p732_p11 }
  0x20   :  { %742 = shalt.err (!%p739_p1)
}
  0x21   :  { %23 = dma.hbm_to_vmem [thread:$0]  %s926_s0, 2048, %s804_s21, [#allocation3], %s771_s30, %s771_s30, %s772_s6  }
  0x22   :  { %s773_s18 = smov [#allocation6]   ;;  %s743_s23 = scalar_lea.hbm %s929_s3, 2048 }
  0x23   :  { %s43_s19 = sshll.u32 %s773_s18, 4  ;;  %p744_p2 = scmp.ne.s32.totalorder %s929_s3, %s743_s23  ;;  %s44_s19 = int_to_ptr.vmem [resolvable:$true] %s43_s19 }
  0x24   :  { %p747_p3 = scmp.lt.u32.totalorder %s743_s23, %s929_s3 }
  0x26   :  { %p749_p4 = pnand %p747_p3, %p744_p2 }
  0x28   :  { %752 = shalt.err (!%p749_p4)
}
  0x29   :  { %s753_s28 = scalar_lea.vmem %s44_s19, 2048  ;;  %p758_p6 = scmp.lt.s32.totalorder %s44_s19, %s44_s19 }
  0x2a   :  { %p754_p5 = scmp.ne.s32.totalorder %s44_s19, %s753_s28  ;;  %p759_p7 = scmp.lt.s32.totalorder %s753_s28, %s753_s28 }
  0x2c   :  { %p760_p8 = por %p759_p7, %p758_p6 }
  0x2e   :  { %p761_p9 = pnand %p760_p8, %p754_p5 }
  0x30   :  { %764 = shalt.err (!%p761_p9)
}
  0x31   :  { %49 = dma.hbm_to_vmem [thread:$0]  %s929_s3, 2048, %s44_s19, [#allocation5], %s771_s30, %s771_s30, %s772_s6  }
  0x32   :  { %765 = dma.done.wait [#allocation3], 2048  }
  0x33   :  { %766 = vsyncadd [#allocation3], 4294965248 }
  0x34   :  { %767 = dma.done.wait [#allocation5], 4096  }
  0x35   :  { %768 = vsyncadd [#allocation5], 4294963200  ;;  %v77_v0 = vld [vmem:[#allocation4] sm:$0xff]  ;;  %v78_v1 = vld [vmem:[#allocation4 + $0x8] sm:$0xff]  ;;  %vm429_vm0 = vcmask 39936  }
  0x36   :  { %v79_v2 = vld [vmem:[#allocation4 + $0x10] sm:$0xff]  ;;  %v630_v3 = vpack.c.bf16 %v78_v1, %v77_v0  ;;  %v80_v4 = vld [vmem:[#allocation4 + $0x18] sm:$0xff]  ;;  %v81_v6 = vld [vmem:[#allocation4 + $0x20] sm:$0xff] }
  0x37   :  { %v634_v5 = vpack.c.bf16 %v80_v4, %v79_v2  ;;  %v82_v7 = vld [vmem:[#allocation4 + $0x28] sm:$0xff]  ;;  %v61_v9 = vld [vmem:[#allocation2] sm:$0xff]  ;;  %v83_v10 = vld [vmem:[#allocation4 + $0x30] sm:$0xff] }
  0x38   :  { %631 = vmatprep.subr.bf16.mxu0 %v630_v3  ;;  %v638_v8 = vpack.c.bf16 %v82_v7, %v81_v6  ;;  %v84_v11 = vld [vmem:[#allocation4 + $0x38] sm:$0xff]  ;;  %550 = vmatprep.mubr.f32.mxu0 %v61_v9  ;;  %v85_v13 = vld [vmem:[#allocation4 + $0x40] sm:$0xff]  ;;  %v86_v14 = vld [vmem:[#allocation4 + $0x48] sm:$0xff] }
  0x39   :  { %633 = vmatpush3.bf16.msra.mxu0 %v630_v3  ;;  %v642_v12 = vpack.c.bf16 %v84_v11, %v83_v10  ;;  %v261_v15 = vld [vmem:[#allocation6] sm:$0xff]  ;;  %v262_v16 = vld [vmem:[#allocation6 + $0x8] sm:$0xff]  ;;  %v263_v17 = vld [vmem:[#allocation6 + $0x10] sm:$0xff]  ;;  %v646_v21 = vpack.c.bf16 %v86_v14, %v85_v13 }
  0x3a   :  { %635 = vmatprep.subr.bf16.mxu0 %v634_v5  ;;  %v264_v18 = vld [vmem:[#allocation6 + $0x18] sm:$0xff]  ;;  %v662_v19 = vpack.c.bf16 %v262_v16, %v261_v15  ;;  %v265_v22 = vld [vmem:[#allocation6 + $0x20] sm:$0xff]  ;;  %v266_v23 = vld [vmem:[#allocation6 + $0x28] sm:$0xff] }
  0x3b   :  { %v666_v20 = vpack.c.bf16 %v264_v18, %v263_v17  ;;  %v87_v24 = vld [vmem:[#allocation4 + $0x50] sm:$0xff]  ;;  %v88_v25 = vld [vmem:[#allocation4 + $0x58] sm:$0xff]  ;;  %v670_v26 = vpack.c.bf16 %v266_v23, %v265_v22  ;;  %v89_v30 = vld [vmem:[#allocation4 + $0x60] sm:$0xff] }
  0x3c   :  { %663 = vmatprep.subr.bf16.mxu1 %v662_v19  ;;  %v650_v27 = vpack.c.bf16 %v88_v25, %v87_v24  ;;  %v267_v28 = vld [vmem:[#allocation6 + $0x30] sm:$0xff]  ;;  %v268_v29 = vld [vmem:[#allocation6 + $0x38] sm:$0xff]  ;;  %v90_v31 = vld [vmem:[#allocation4 + $0x68] sm:$0xff] }
  0x3d   :  { %637 = vmatpush3.bf16.msra.mxu0 %v634_v5  ;;  %665 = vmatpush3.bf16.msra.mxu1 %v662_v19  ;;  %v674_v32 = vpack.c.bf16 %v268_v29, %v267_v28  ;;  %v654_v33 = vpack.c.bf16 %v90_v31, %v89_v30  ;;  %v269_v34 = vld [vmem:[#allocation6 + $0x40] sm:$0xff]  ;;  %v270_v35 = vld [vmem:[#allocation6 + $0x48] sm:$0xff]  ;;  %v91_v36 = vld [vmem:[#allocation4 + $0x70] sm:$0xff] }
  0x3e   :  { %639 = vmatprep.subr.bf16.mxu0 %v638_v8  ;;  %667 = vmatprep.subr.bf16.mxu1 %v666_v20  ;;  %v92_v37 = vld [vmem:[#allocation4 + $0x78] sm:$0xff]  ;;  %v678_v38 = vpack.c.bf16 %v270_v35, %v269_v34  ;;  %v271_v40 = vld [vmem:[#allocation6 + $0x50] sm:$0xff]  ;;  %v273_v43 = vld [vmem:[#allocation6 + $0x60] sm:$0xff] }
  0x3f   :  { %v658_v39 = vpack.c.bf16 %v92_v37, %v91_v36  ;;  %v272_v41 = vld [vmem:[#allocation6 + $0x58] sm:$0xff]  ;;  %v274_v44 = vld [vmem:[#allocation6 + $0x68] sm:$0xff]  ;;  %v63_v47 = vld [vmem:[#allocation2 + $0x10] sm:$0xff] }
  0x40   :  { %v682_v42 = vpack.c.bf16 %v272_v41, %v271_v40  ;;  %v62_v45 = vld [vmem:[#allocation2 + $0x8] sm:$0xff]  ;;  %v686_v46 = vpack.c.bf16 %v274_v44, %v273_v43  ;;  %v64_v48 = vld [vmem:[#allocation2 + $0x18] sm:$0xff]  ;;  %v65_v49 = vld [vmem:[#allocation2 + $0x20] sm:$0xff] }
  0x41   :  { %641 = vmatpush3.bf16.msra.mxu0 %v638_v8  ;;  %669 = vmatpush3.bf16.msra.mxu1 %v666_v20  ;;  %v66_v50 = vld [vmem:[#allocation2 + $0x28] sm:$0xff]  ;;  %v67_v51 = vld [vmem:[#allocation2 + $0x30] sm:$0xff]  ;;  %v68_v52 = vld [vmem:[#allocation2 + $0x38] sm:$0xff] }
  0x42   :  { %643 = vmatprep.subr.bf16.mxu0 %v642_v12  ;;  %671 = vmatprep.subr.bf16.mxu1 %v670_v26  ;;  %v69_v53 = vld [vmem:[#allocation2 + $0x40] sm:$0xff]  ;;  %v70_v54 = vld [vmem:[#allocation2 + $0x48] sm:$0xff]  ;;  %v71_v55 = vld [vmem:[#allocation2 + $0x50] sm:$0xff] }
  0x43   :  { %v72_v56 = vld [vmem:[#allocation2 + $0x58] sm:$0xff]  ;;  %v73_v57 = vld [vmem:[#allocation2 + $0x60] sm:$0xff]  ;;  %v74_v58 = vld [vmem:[#allocation2 + $0x68] sm:$0xff] }
  0x44   :  { %v75_v59 = vld [vmem:[#allocation2 + $0x70] sm:$0xff]  ;;  %v76_v60 = vld [vmem:[#allocation2 + $0x78] sm:$0xff]  ;;  %v452_v0 = vld [vmem:[%s928_s2] ss:$0 sm:$0xff] }
  0x45   :  { %645 = vmatpush3.bf16.msra.mxu0 %v642_v12  ;;  %673 = vmatpush3.bf16.msra.mxu1 %v670_v26  ;;  %v275_v61 = vld [vmem:[#allocation6 + $0x70] sm:$0xff]  ;;  %v276_v62 = vld [vmem:[#allocation6 + $0x78] sm:$0xff] }
  0x46   :  { %647 = vmatprep.subr.bf16.mxu0 %v646_v21  ;;  %675 = vmatprep.subr.bf16.mxu1 %v674_v32  ;;  %v690_v63 = vpack.c.bf16 %v276_v62, %v275_v61 }
  0x49   :  { %649 = vmatpush3.bf16.msra.mxu0 %v646_v21  ;;  %677 = vmatpush3.bf16.msra.mxu1 %v674_v32 }
  0x4a   :  { %651 = vmatprep.subr.bf16.mxu0 %v650_v27  ;;  %679 = vmatprep.subr.bf16.mxu1 %v678_v38 }
  0x4d   :  { %653 = vmatpush3.bf16.msra.mxu0 %v650_v27  ;;  %681 = vmatpush3.bf16.msra.mxu1 %v678_v38 }
  0x4e   :  { %655 = vmatprep.subr.bf16.mxu0 %v654_v33  ;;  %683 = vmatprep.subr.bf16.mxu1 %v682_v42 }
  0x51   :  { %657 = vmatpush3.bf16.msra.mxu0 %v654_v33  ;;  %685 = vmatpush3.bf16.msra.mxu1 %v682_v42 }
  0x52   :  { %659 = vmatprep.subr.bf16.mxu0 %v658_v39  ;;  %687 = vmatprep.subr.bf16.mxu1 %v686_v46 }
  0x55   :  { %661 = vmatpush3.bf16.msra.mxu0 %v658_v39  ;;  %689 = vmatpush3.bf16.msra.mxu1 %v686_v46 }
  0x56   :  { %691 = vmatprep.subr.bf16.mxu1 %v690_v63 }
  0x58   :  { %551 = vmatmul.mubr.f32.vlgmr.msra.gmra.mrb[0].mxu0 %v62_v45 }
  0x59   :  { %553 = vmatprep.mubr.f32.mxu0 %v63_v47  ;;  %693 = vmatpush3.bf16.msra.mxu1 %v690_v63 }
  0x5c   :  { %554 = vmatmul.mubr.f32.gmra.mrb[2].mxu0 %v64_v48 }
  0x5d   :  { %556 = vmatprep.mubr.f32.mxu0 %v65_v49  ;;  %v453_v49 = vld [vmem:[%s930_s4] ss:$0 sm:$0xff] }
  0x60   :  { %557 = vmatmul.mubr.f32.gmra.mrb[4].mxu0 %v66_v50 }
  0x61   :  { %559 = vmatprep.mubr.f32.mxu0 %v67_v51 }
  0x64   :  { %560 = vmatmul.mubr.f32.gmra.mrb[6].mxu0 %v68_v52 }
  0x65   :  { %562 = vmatprep.mubr.f32.mxu0 %v69_v53 }
  0x68   :  { %563 = vmatmul.mubr.f32.gmra.mrb[8].mxu0 %v70_v54 }
  0x69   :  { %565 = vmatprep.mubr.f32.mxu0 %v71_v55 }
  0x6c   :  { %566 = vmatmul.mubr.f32.gmra.mrb[10].mxu0 %v72_v56 }
  0x6d   :  { %568 = vmatprep.mubr.f32.mxu0 %v73_v57 }
  0x70   :  { %569 = vmatmul.mubr.f32.gmra.mrb[12].mxu0 %v74_v58 }
  0x71   :  { %571 = vmatprep.mubr.f32.mxu0 %v75_v59 }
  0x74   :  { %572 = vmatmul.mubr.f32.gmra.mrb[14].mxu0 %v76_v60 }
 0x12b   :  { %v552_v1 = vpop.f32.mrb[0].mxu0 }
 0x12c   :  { %v172_v2 = vadd.f32 %v552_v1, %v452_v0  ;;  %v166_v3 = vpop.f32.mrb[1].mxu0 }
 0x12d   :  { %v167_v4 = vadd.f32 %v452_v0, %v166_v3 }
 0x12e   :  { %v246_v7 = vmax.f32 %v172_v2, 0.0 }
 0x12f   :  { %v555_v5 = vpop.f32.mrb[2].mxu0  ;;  %v245_v6 = vmax.f32 %v167_v4, 0.0 }
 0x130   :  { %v182_v8 = vadd.f32 %v555_v5, %v452_v0  ;;  %v176_v9 = vpop.f32.mrb[3].mxu0 }
 0x131   :  { %v177_v10 = vadd.f32 %v452_v0, %v176_v9  ;;  %606 = vmatprep.mubr.f32.mxu1 %v245_v6 }
 0x132   :  { %607 = vmatmul.mubr.f32.vlgmr.msra.gmra.mrb[0].mxu1 %v246_v7  ;;  %v248_v13 = vmax.f32 %v182_v8, 0.0 }
 0x133   :  { %v247_v11 = vmax.f32 %v177_v10, 0.0  ;;  %v558_v12 = vpop.f32.mrb[4].mxu0 }
 0x134   :  { %v192_v14 = vadd.f32 %v558_v12, %v452_v0  ;;  %v186_v15 = vpop.f32.mrb[5].mxu0 }
 0x135   :  { %v187_v16 = vadd.f32 %v452_v0, %v186_v15  ;;  %609 = vmatprep.mubr.f32.mxu1 %v247_v11 }
 0x136   :  { %610 = vmatmul.mubr.f32.gmra.mrb[2].mxu1 %v248_v13  ;;  %v250_v19 = vmax.f32 %v192_v14, 0.0 }
 0x137   :  { %v249_v17 = vmax.f32 %v187_v16, 0.0  ;;  %v561_v18 = vpop.f32.mrb[6].mxu0 }
 0x138   :  { %v202_v20 = vadd.f32 %v561_v18, %v452_v0  ;;  %v196_v21 = vpop.f32.mrb[7].mxu0 }
 0x139   :  { %v197_v22 = vadd.f32 %v452_v0, %v196_v21  ;;  %612 = vmatprep.mubr.f32.mxu1 %v249_v17 }
 0x13a   :  { %613 = vmatmul.mubr.f32.gmra.mrb[4].mxu1 %v250_v19  ;;  %v252_v25 = vmax.f32 %v202_v20, 0.0 }
 0x13b   :  { %v251_v23 = vmax.f32 %v197_v22, 0.0  ;;  %v564_v24 = vpop.f32.mrb[8].mxu0 }
 0x13c   :  { %v212_v26 = vadd.f32 %v564_v24, %v452_v0  ;;  %v206_v27 = vpop.f32.mrb[9].mxu0 }
 0x13d   :  { %v207_v28 = vadd.f32 %v452_v0, %v206_v27  ;;  %615 = vmatprep.mubr.f32.mxu1 %v251_v23 }
 0x13e   :  { %616 = vmatmul.mubr.f32.gmra.mrb[6].mxu1 %v252_v25  ;;  %v254_v31 = vmax.f32 %v212_v26, 0.0 }
 0x13f   :  { %v253_v29 = vmax.f32 %v207_v28, 0.0  ;;  %v567_v30 = vpop.f32.mrb[10].mxu0 }
 0x140   :  { %v222_v32 = vadd.f32 %v567_v30, %v452_v0  ;;  %v216_v33 = vpop.f32.mrb[11].mxu0 }
 0x141   :  { %v217_v34 = vadd.f32 %v452_v0, %v216_v33  ;;  %618 = vmatprep.mubr.f32.mxu1 %v253_v29 }
 0x142   :  { %619 = vmatmul.mubr.f32.gmra.mrb[8].mxu1 %v254_v31  ;;  %v256_v37 = vmax.f32 %v222_v32, 0.0 }
 0x143   :  { %v255_v35 = vmax.f32 %v217_v34, 0.0  ;;  %v570_v36 = vpop.f32.mrb[12].mxu0 }
 0x144   :  { %v232_v38 = vadd.f32 %v570_v36, %v452_v0  ;;  %v226_v39 = vpop.f32.mrb[13].mxu0 }
 0x145   :  { %v227_v40 = vadd.f32 %v452_v0, %v226_v39  ;;  %621 = vmatprep.mubr.f32.mxu1 %v255_v35 }
 0x146   :  { %622 = vmatmul.mubr.f32.gmra.mrb[10].mxu1 %v256_v37  ;;  %v258_v43 = vmax.f32 %v232_v38, 0.0 }
 0x147   :  { %v257_v41 = vmax.f32 %v227_v40, 0.0  ;;  %v573_v42 = vpop.f32.mrb[14].mxu0 }
 0x148   :  { %v242_v44 = vadd.f32 %v573_v42, %v452_v0  ;;  %v236_v45 = vpop.f32.mrb[15].mxu0 }
 0x149   :  { %v237_v46 = vadd.f32 %v452_v0, %v236_v45  ;;  %624 = vmatprep.mubr.f32.mxu1 %v257_v41 }
 0x14a   :  { %625 = vmatmul.mubr.f32.gmra.mrb[12].mxu1 %v258_v43  ;;  %v260_v48 = vmax.f32 %v242_v44, 0.0 }
 0x14b   :  { %v259_v47 = vmax.f32 %v237_v46, 0.0 }
 0x14d   :  { %627 = vmatprep.mubr.f32.mxu1 %v259_v47 }
 0x14e   :  { %628 = vmatmul.mubr.f32.gmra.mrb[14].mxu1 %v260_v48 }
 0x205   :  { %v608_v50 = vpop.f32.mrb[0].mxu1 }
 0x206   :  { %v356_v51 = vadd.f32 %v608_v50, %v453_v49  ;;  %v350_v52 = vpop.f32.mrb[1].mxu1 }
 0x207   :  { %v351_v53 = vadd.f32 %v453_v49, %v350_v52 }
 0x208   :  { %431 = vst.msk [vmem:[%s931_s5 + $0x8] sm:$0xff] %vm429_vm0, %v356_v51 }
 0x209   :  { %430 = vst.msk [vmem:[%s931_s5] sm:$0xff] %vm429_vm0, %v351_v53  ;;  %v611_v54 = vpop.f32.mrb[2].mxu1 }
 0x20a   :  { %v366_v55 = vadd.f32 %v611_v54, %v453_v49  ;;  %v360_v56 = vpop.f32.mrb[3].mxu1 }
 0x20b   :  { %v361_v57 = vadd.f32 %v453_v49, %v360_v56 }
 0x20c   :  { %433 = vst.msk [vmem:[%s931_s5 + $0x18] sm:$0xff] %vm429_vm0, %v366_v55 }
 0x20d   :  { %432 = vst.msk [vmem:[%s931_s5 + $0x10] sm:$0xff] %vm429_vm0, %v361_v57  ;;  %v614_v58 = vpop.f32.mrb[4].mxu1 }
 0x20e   :  { %v376_v59 = vadd.f32 %v614_v58, %v453_v49  ;;  %v370_v60 = vpop.f32.mrb[5].mxu1 }
 0x20f   :  { %v371_v61 = vadd.f32 %v453_v49, %v370_v60 }
 0x210   :  { %435 = vst.msk [vmem:[%s931_s5 + $0x28] sm:$0xff] %vm429_vm0, %v376_v59 }
 0x211   :  { %434 = vst.msk [vmem:[%s931_s5 + $0x20] sm:$0xff] %vm429_vm0, %v371_v61  ;;  %v617_v62 = vpop.f32.mrb[6].mxu1 }
 0x212   :  { %v386_v63 = vadd.f32 %v617_v62, %v453_v49  ;;  %v380_v0 = vpop.f32.mrb[7].mxu1 }
 0x213   :  { %v381_v1 = vadd.f32 %v453_v49, %v380_v0 }
 0x214   :  { %437 = vst.msk [vmem:[%s931_s5 + $0x38] sm:$0xff] %vm429_vm0, %v386_v63 }
 0x215   :  { %436 = vst.msk [vmem:[%s931_s5 + $0x30] sm:$0xff] %vm429_vm0, %v381_v1  ;;  %v620_v2 = vpop.f32.mrb[8].mxu1 }
 0x216   :  { %v396_v3 = vadd.f32 %v620_v2, %v453_v49  ;;  %v390_v4 = vpop.f32.mrb[9].mxu1 }
 0x217   :  { %v391_v5 = vadd.f32 %v453_v49, %v390_v4 }
 0x218   :  { %439 = vst.msk [vmem:[%s931_s5 + $0x48] sm:$0xff] %vm429_vm0, %v396_v3 }
 0x219   :  { %438 = vst.msk [vmem:[%s931_s5 + $0x40] sm:$0xff] %vm429_vm0, %v391_v5  ;;  %v623_v6 = vpop.f32.mrb[10].mxu1 }
 0x21a   :  { %v406_v7 = vadd.f32 %v623_v6, %v453_v49  ;;  %v400_v8 = vpop.f32.mrb[11].mxu1 }
 0x21b   :  { %v401_v9 = vadd.f32 %v453_v49, %v400_v8 }
 0x21c   :  { %441 = vst.msk [vmem:[%s931_s5 + $0x58] sm:$0xff] %vm429_vm0, %v406_v7 }
 0x21d   :  { %440 = vst.msk [vmem:[%s931_s5 + $0x50] sm:$0xff] %vm429_vm0, %v401_v9  ;;  %v626_v10 = vpop.f32.mrb[12].mxu1 }
 0x21e   :  { %v416_v11 = vadd.f32 %v626_v10, %v453_v49  ;;  %v410_v12 = vpop.f32.mrb[13].mxu1 }
 0x21f   :  { %v411_v13 = vadd.f32 %v453_v49, %v410_v12 }
 0x220   :  { %443 = vst.msk [vmem:[%s931_s5 + $0x68] sm:$0xff] %vm429_vm0, %v416_v11 }
 0x221   :  { %442 = vst.msk [vmem:[%s931_s5 + $0x60] sm:$0xff] %vm429_vm0, %v411_v13  ;;  %v629_v14 = vpop.f32.mrb[14].mxu1 }
 0x222   :  { %v426_v15 = vadd.f32 %v629_v14, %v453_v49  ;;  %v420_v16 = vpop.f32.mrb[15].mxu1 }
 0x223   :  { %v421_v17 = vadd.f32 %v453_v49, %v420_v16 }
 0x224   :  { %445 = vst.msk [vmem:[%s931_s5 + $0x78] sm:$0xff] %vm429_vm0, %v426_v15 }
 0x225   :  { %444 = vst.msk [vmem:[%s931_s5 + $0x70] sm:$0xff] %vm429_vm0, %v421_v17 }
 0x226   :  { %450 = vsyncpa [#allocation3], 1 }
 0x227   :  { %451 = vsyncpa [#allocation5], 1 }

</bundles_post_ra>
